<compile_context>
chip_gen: v7x
topology: tpu7x:2x2x1
jax: 0.10.0
libtpu: 0.0.40
codegen_flags: <defaults>
</compile_context>

<pallas_src>
import jax
import jax.numpy as jnp
from jax.experimental import pallas as pl
from jax.experimental.pallas import tpu as pltpu

KSIZE = 5
PAD = 2
INV_AREA = 1.0 / (KSIZE * KSIZE)  # matches torch.ones(5, 5) / 25, static constant


def _ave_filter_kernel(x_ref, o_ref, pad_ref):
    # x_ref  : (BC, H,  W)      unpadded input channels for this grid step
    # o_ref  : (BC, H,  W)      filtered output
    # pad_ref: (BC, H+4, W+4)   f32 VMEM scratch holding the zero-padded tile
    BC, H, W = o_ref.shape
    Wp = W + 2 * PAD

    # Zero only the 2-wide halo ring (the interior is fully overwritten every
    # step), then store the block interior. This replaces a wrapper-side
    # jnp.pad pass (which would cost a full extra HBM read + write).
    pad_ref[:, 0:PAD, :] = jnp.zeros((BC, PAD, Wp), jnp.float32)
    pad_ref[:, PAD + H:PAD + H + PAD, :] = jnp.zeros((BC, PAD, Wp), jnp.float32)
    pad_ref[:, PAD:PAD + H, 0:PAD] = jnp.zeros((BC, H, PAD), jnp.float32)
    pad_ref[:, PAD:PAD + H, PAD + W:PAD + W + PAD] = jnp.zeros(
        (BC, H, PAD), jnp.float32)
    pad_ref[:, PAD:PAD + H, PAD:PAD + W] = x_ref[...].astype(jnp.float32)

    xpad = pad_ref[...]                                      # (BC, H+4, W+4)

    # Separable 5x5 box filter: vertical 5-tap sum (sublane shifts), then
    # horizontal 5-tap sum (lane shifts), then a single scale by 1/25.
    v = (xpad[:, 0:H, :] + xpad[:, 1:H + 1, :] + xpad[:, 2:H + 2, :]
         + xpad[:, 3:H + 3, :] + xpad[:, 4:H + 4, :])        # (BC, H, W+4)
    h = (v[:, :, 0:W] + v[:, :, 1:W + 1] + v[:, :, 2:W + 2]
         + v[:, :, 3:W + 3] + v[:, :, 4:W + 4])              # (BC, H, W)

    o_ref[...] = (h * INV_AREA).astype(o_ref.dtype)


def _choose_block_channels(nc, h, w, elem_bytes):
    """Largest divisor of nc whose per-step VMEM footprint (double-buffered
    in/out blocks + padded f32 scratch) stays within ~24 MiB, while keeping
    >= 2 grid steps when possible (so 'parallel' can shard across cores)."""
    hp, wp = h + 2 * PAD, w + 2 * PAD
    per_ch = (2 * h * w * elem_bytes        # input block, double-buffered
              + 2 * h * w * elem_bytes      # output block, double-buffered
              + hp * wp * 4)                # f32 padded scratch (single)
    budget = 24 * 1024 * 1024
    cap = max(1, budget // per_ch)
    if nc >= 2:
        cap = min(cap, nc // 2)
    cap = max(1, min(cap, nc))
    bc = 1
    for d in range(1, int(cap) + 1):
        if nc % d == 0:
            bc = d
    return bc


def ave_filter(x):
    """x: (N, C, H, W) -> (N, C, H, W); 5x5 box filter, zero padding = 2."""
    N, C, H, W = x.shape
    nc = N * C
    bc = _choose_block_channels(nc, H, W, x.dtype.itemsize)
    grid = nc // bc
    hp, wp = H + 2 * PAD, W + 2 * PAD

    # Collapsing (N, C) into one axis only touches leading dims -> free.
    x_flat = x.reshape(nc, H, W)

    out_flat = pl.pallas_call(
        _ave_filter_kernel,
        out_shape=jax.ShapeDtypeStruct((nc, H, W), x.dtype),
        grid_spec=pltpu.PrefetchScalarGridSpec(
            num_scalar_prefetch=0,
            grid=(grid,),
            in_specs=[pl.BlockSpec((bc, H, W), lambda i: (i, 0, 0))],
            out_specs=pl.BlockSpec((bc, H, W), lambda i: (i, 0, 0)),
            scratch_shapes=[pltpu.VMEM((bc, hp, wp), jnp.float32)],
        ),
        compiler_params=pltpu.CompilerParams(
            dimension_semantics=("parallel",),
            vmem_limit_bytes=32 * 1024 * 1024,
        ),
    )(x_flat)
    return out_flat.reshape(N, C, H, W)


def _reference(x):
    # Pure-JAX reference: depthwise 5x5 conv with uniform weights, padding=2.
    N, C, H, W = x.shape
    w = jnp.full((C, 1, KSIZE, KSIZE), INV_AREA, dtype=x.dtype)
    return jax.lax.conv_general_dilated(
        x, w,
        window_strides=(1, 1),
        padding=((PAD, PAD), (PAD, PAD)),
        dimension_numbers=("NCHW", "OIHW", "NCHW"),
        feature_group_count=C,
    )


if __name__ == "__main__":
    key = jax.random.PRNGKey(0)
    x = jax.random.normal(key, (2, 4, 16, 16), dtype=jnp.float32)

    out = jax.block_until_ready(ave_filter(x))

    ref = _reference(x)
    assert out.shape == (2, 4, 16, 16)
    # Sum-then-scale changes FP rounding order slightly vs. per-tap weights;
    # compare with tolerance.
    assert jnp.allclose(out, ref, atol=1e-5, rtol=1e-5)

    print("KERNEL_OK")
</pallas_src>

<mosaic_0001>
module attributes {stable_mosaic.version = 11 : i64} {
  func.func @_ave_filter_kernel(%arg0: i32, %arg1: memref<4x16x16xf32, #tpu.memory_space<vmem>>, %arg2: memref<4x16x16xf32, #tpu.memory_space<vmem>>, %arg3: memref<4x20x20xf32, #tpu.memory_space<vmem>>) attributes {dimension_semantics = [#tpu.dimension_semantics<parallel>], iteration_bounds = array<i64: 2>, scalar_prefetch = 0 : i64, scratch_operands = 1 : i64, tpu.core_type = #tpu.core_type<tc>, window_params = [{transform_indices = @transform_0, window_bounds = array<i64: 4, 16, 16>}, {transform_indices = @transform_1, window_bounds = array<i64: 4, 16, 16>}]} {
    %cst = arith.constant 0.000000e+00 : f32
    %0 = vector.broadcast %cst : f32 to vector<4x2x20xf32>
    %c0 = arith.constant 0 : index
    %c0_0 = arith.constant 0 : index
    %c0_1 = arith.constant 0 : index
    %1 = vector.load %arg3[%c0, %c0_0, %c0_1] : memref<4x20x20xf32, #tpu.memory_space<vmem>>, vector<4x2x20xf32>
    tpu.vector_store %arg3[%c0, %c0_0, %c0_1], %0 {strides = array<i32>} : memref<4x20x20xf32, #tpu.memory_space<vmem>>, vector<4x2x20xf32>,
    %cst_2 = arith.constant 0.000000e+00 : f32
    %2 = vector.broadcast %cst_2 : f32 to vector<4x2x20xf32>
    %c0_3 = arith.constant 0 : index
    %c18 = arith.constant 18 : index
    %c0_4 = arith.constant 0 : index
    %3 = vector.load %arg3[%c0_3, %c18, %c0_4] : memref<4x20x20xf32, #tpu.memory_space<vmem>>, vector<4x2x20xf32>
    tpu.vector_store %arg3[%c0_3, %c18, %c0_4], %2 {strides = array<i32>} : memref<4x20x20xf32, #tpu.memory_space<vmem>>, vector<4x2x20xf32>,
    %cst_5 = arith.constant 0.000000e+00 : f32
    %4 = vector.broadcast %cst_5 : f32 to vector<4x16x2xf32>
    %c0_6 = arith.constant 0 : index
    %c2 = arith.constant 2 : index
    %c0_7 = arith.constant 0 : index
    %5 = vector.load %arg3[%c0_6, %c2, %c0_7] : memref<4x20x20xf32, #tpu.memory_space<vmem>>, vector<4x16x2xf32>
    tpu.vector_store %arg3[%c0_6, %c2, %c0_7], %4 {strides = array<i32>} : memref<4x20x20xf32, #tpu.memory_space<vmem>>, vector<4x16x2xf32>,
    %cst_8 = arith.constant 0.000000e+00 : f32
    %6 = vector.broadcast %cst_8 : f32 to vector<4x16x2xf32>
    %c0_9 = arith.constant 0 : index
    %c2_10 = arith.constant 2 : index
    %c18_11 = arith.constant 18 : index
    %7 = vector.load %arg3[%c0_9, %c2_10, %c18_11] : memref<4x20x20xf32, #tpu.memory_space<vmem>>, vector<4x16x2xf32>
    tpu.vector_store %arg3[%c0_9, %c2_10, %c18_11], %6 {strides = array<i32>} : memref<4x20x20xf32, #tpu.memory_space<vmem>>, vector<4x16x2xf32>,
    %c0_12 = arith.constant 0 : index
    %c0_13 = arith.constant 0 : index
    %c0_14 = arith.constant 0 : index
    %8 = vector.load %arg1[%c0_12, %c0_13, %c0_14] : memref<4x16x16xf32, #tpu.memory_space<vmem>>, vector<4x16x16xf32>
    %c0_15 = arith.constant 0 : index
    %c2_16 = arith.constant 2 : index
    %c2_17 = arith.constant 2 : index
    %9 = vector.load %arg3[%c0_15, %c2_16, %c2_17] : memref<4x20x20xf32, #tpu.memory_space<vmem>>, vector<4x16x16xf32>
    tpu.vector_store %arg3[%c0_15, %c2_16, %c2_17], %8 {strides = array<i32>} : memref<4x20x20xf32, #tpu.memory_space<vmem>>, vector<4x16x16xf32>,
    %c0_18 = arith.constant 0 : index
    %c0_19 = arith.constant 0 : index
    %c0_20 = arith.constant 0 : index
    %10 = vector.load %arg3[%c0_18, %c0_19, %c0_20] : memref<4x20x20xf32, #tpu.memory_space<vmem>>, vector<4x20x20xf32>
    %11 = vector.extract_strided_slice %10 {offsets = [0, 0, 0], sizes = [4, 16, 20], strides = [1, 1, 1]} : vector<4x20x20xf32> to vector<4x16x20xf32>
    %12 = vector.extract_strided_slice %10 {offsets = [0, 1, 0], sizes = [4, 16, 20], strides = [1, 1, 1]} : vector<4x20x20xf32> to vector<4x16x20xf32>
    %13 = arith.addf %11, %12 : vector<4x16x20xf32>
    %14 = vector.extract_strided_slice %10 {offsets = [0, 2, 0], sizes = [4, 16, 20], strides = [1, 1, 1]} : vector<4x20x20xf32> to vector<4x16x20xf32>
    %15 = arith.addf %13, %14 : vector<4x16x20xf32>
    %16 = vector.extract_strided_slice %10 {offsets = [0, 3, 0], sizes = [4, 16, 20], strides = [1, 1, 1]} : vector<4x20x20xf32> to vector<4x16x20xf32>
    %17 = arith.addf %15, %16 : vector<4x16x20xf32>
    %18 = vector.extract_strided_slice %10 {offsets = [0, 4, 0], sizes = [4, 16, 20], strides = [1, 1, 1]} : vector<4x20x20xf32> to vector<4x16x20xf32>
    %19 = arith.addf %17, %18 : vector<4x16x20xf32>
    %20 = vector.extract_strided_slice %19 {offsets = [0, 0, 0], sizes = [4, 16, 16], strides = [1, 1, 1]} : vector<4x16x20xf32> to vector<4x16x16xf32>
    %21 = vector.extract_strided_slice %19 {offsets = [0, 0, 1], sizes = [4, 16, 16], strides = [1, 1, 1]} : vector<4x16x20xf32> to vector<4x16x16xf32>
    %22 = arith.addf %20, %21 : vector<4x16x16xf32>
    %23 = vector.extract_strided_slice %19 {offsets = [0, 0, 2], sizes = [4, 16, 16], strides = [1, 1, 1]} : vector<4x16x20xf32> to vector<4x16x16xf32>
    %24 = arith.addf %22, %23 : vector<4x16x16xf32>
    %25 = vector.extract_strided_slice %19 {offsets = [0, 0, 3], sizes = [4, 16, 16], strides = [1, 1, 1]} : vector<4x16x20xf32> to vector<4x16x16xf32>
    %26 = arith.addf %24, %25 : vector<4x16x16xf32>
    %27 = vector.extract_strided_slice %19 {offsets = [0, 0, 4], sizes = [4, 16, 16], strides = [1, 1, 1]} : vector<4x16x20xf32> to vector<4x16x16xf32>
    %28 = arith.addf %26, %27 : vector<4x16x16xf32>
    %cst_21 = arith.constant 4.000000e-02 : f32
    %29 = vector.broadcast %cst_21 : f32 to vector<4x16x16xf32>
    %30 = arith.mulf %28, %29 : vector<4x16x16xf32>
    %c0_22 = arith.constant 0 : index
    %c0_23 = arith.constant 0 : index
    %c0_24 = arith.constant 0 : index
    %31 = vector.load %arg2[%c0_22, %c0_23, %c0_24] : memref<4x16x16xf32, #tpu.memory_space<vmem>>, vector<4x16x16xf32>
    tpu.vector_store %arg2[%c0_22, %c0_23, %c0_24], %30 {strides = array<i32>} : memref<4x16x16xf32, #tpu.memory_space<vmem>>, vector<4x16x16xf32>,
    return
  }
  func.func @transform_0(%arg0: i32) -> (i32, i32, i32) {
    %c0_i32 = arith.constant 0 : i32
    %c0_i32_0 = arith.constant 0 : i32
    %c0_i32_1 = arith.constant 0 : i32
    return %arg0, %c0_i32, %c0_i32_0 : i32, i32, i32
  }
  func.func @transform_1(%arg0: i32) -> (i32, i32, i32) {
    %c0_i32 = arith.constant 0 : i32
    %c0_i32_0 = arith.constant 0 : i32
    %c0_i32_1 = arith.constant 0 : i32
    return %arg0, %c0_i32, %c0_i32_0 : i32, i32, i32
  }
}

</mosaic_0001>

<bundles_post_ra>
// kernel: tpu_custom_call.1
= control target key start
LH: loop header
LB: loop body
LE: loop exit
PB: predicated region body
PF: predicated region fallthrough
CT: control target
= control target key end

     0   :  { %6 = vsyncpa [#allocation4], 0  ;;  %s1159_s0 = inlined_call_operand.hbm [shape: f32[8,16,16], index: 0, kind: input, shape index: {}]   ;;  %s1160_s1 = inlined_call_operand.hbm [shape: f32[8,16,16], index: 1, kind: output, shape index: {}]  }
   0x1   :  { %8 = vsyncpa [#allocation4 + $0x1], 0 }
   0x2   :  { %9 = vsyncpa [#allocation5], 0 }
   0x3   :  { %11 = vsyncpa [#allocation5 + $0x1], 0  ;;  %s823_s6 = smov 0   ;;  %s825_s7 = smov 0  }
   0x4   :  { %s827_s8 = smov 0   ;;  %s829_s9 = smov 0  }
   0x5 LB: > { %s844_s10 = sadd.s32 4294967295, %s799_s9   ;;  %s627_s11 = sadd.s32 4294967294, %s799_s9   ;;  %s799_s9 = sphi %s829_s9, %s1173_s9   ;;  %s795_s8 = sphi %s827_s8, %s1172_s8   ;;  %s791_s7 = sphi %s825_s7, %s1171_s7   ;;  %s787_s6 = sphi %s823_s6, %s1170_s6  }
   0x6   : > { %s848_s12 = sadd.s32 1, %s799_s9   ;;  %s24_s13 = sadd.s32 1, %s795_s8 }
   0x7   : > { %s21_s14 = ssub.s32 %s799_s9, %s848_s12  ;;  %p31_p0 = scmp.ne.s32.totalorder %s795_s8, %s791_s7 }
   0x8   : > { %p22_p1 = scmp.eq.s32.totalorder %s21_s14, 0  ;;  %p32_p2 = scmp.eq.s32.totalorder %s799_s9, 0 }
   0x9   : > { %p37_p3 = scmp.ne.s32.totalorder %s791_s7, %s787_s6  ;;  %p38_p4 = scmp.eq.s32.totalorder %s844_s10, 0 }
   0xa   : > { %s860_s15 = scalar_select %p22_p1, %s795_s8, %s24_s13  }
   0xb   : > { %p862_p5 = por %p32_p2, %p31_p0  ;;  %p866_p6 = por %p38_p4, %p37_p3 }
   0xc   : > { %p61_p7 = scmp.eq.s32.totalorder %s844_s10, 1  ;;  %p67_p8 = scmp.eq.s32.totalorder %s627_s11, 1 }
   0xd   : > { %p659_p10 = scmp.lt.s32.totalorder %s799_s9, 2  ;;  %s87_s20 = sand.u32 1, %s795_s8  }
   0xe   : > { %p873_p11 = por %p61_p7, %p31_p0  ;;  %p877_p12 = por %p67_p8, %p37_p3 }
   0xf   : > { %s644_s21 = sshll.u32 %s799_s9, 10  ;;  %s630_s22 = sshll.u32 %s87_s20, 6 }
  0x10   : > { %s1164_s18 = scalar_select %p873_p11, 1, 0 }
  0x11   : > { %s1165_s19 = scalar_select %p877_p12, 1, 0 }
  0x12   : > { %s886_s25 = scalar_lea.hbm %s1159_s0, %s644_s21  ;;  %s91_s26 = scalar_lea.vmem [#allocation3], %s630_s22 }
  0x13   : > { %s99_s27 = sshll.u32 %s91_s26, 4  ;;  %p890_p13 = pnand %p659_p10, %p862_p5  ;;  %s894_s27 = int_to_ptr.vmem [resolvable:$true] %s99_s27 }
  0x14   : > { %s896_s29 = scalar_lea.sflag [#allocation4], %s87_s20  ;;  %s703_s30 = scalar_lea.hbm %s886_s25, 1024 }
  0x15   : > { %p704_p0 = scmp.ne.s32.totalorder %s886_s25, %s703_s30  ;;  %p705_p1 = pneg %p890_p13 }
  0x16   : > { %s708_s4 = scalar_lea.hbm %s1159_s0, 2048  ;;  %p709_p4 = scmp.lt.u32.totalorder %s886_s25, %s1159_s0 }
  0x17   : > { %p706_p2 = pnand %p705_p1, %p704_p0  ;;  %p710_p5 = scmp.lt.u32.totalorder %s708_s4, %s703_s30 }
  0x18   : > { %p712_p8 = scmp.lt.u32.totalorder %s703_s30, %s886_s25 }
  0x19   : > { %p707_p3 = pneg %p706_p2  ;;  %p711_p7 = por %p710_p5, %p709_p4 }
  0x1b   : > { %p713_p10 = por %p712_p8, %p711_p7 }
  0x1d   : > { %p714_p9 = pnand %p713_p10, %p707_p3 }
  0x1f   : > { %717 = shalt.err (!%p714_p9)
}
  0x20   : > { %s718_s13 = scalar_lea.vmem %s894_s27, 1024  ;;  %s801_s14 = smov [#allocation3]  }
  0x21   : > { %p719_p0 = scmp.ne.s32.totalorder %s894_s27, %s718_s13  ;;  %s723_s16 = sshll.u32 %s801_s14, 4  ;;  %s724_s16 = int_to_ptr.vmem [resolvable:$false] %s723_s16 }
  0x22   : > { %s725_s20 = scalar_lea.vmem %s724_s16, 2048  ;;  %p726_p11 = scmp.lt.s32.totalorder %s894_s27, %s724_s16 }
  0x23   : > { %p721_p2 = pnand %p719_p0, %p705_p1  ;;  %p727_p4 = scmp.lt.s32.totalorder %s725_s20, %s718_s13 }
  0x25   : > { %p722_p12 = pneg %p721_p2  ;;  %p728_p5 = por %p727_p4, %p726_p11 }
  0x27   : > { %p729_p7 = pnand %p728_p5, %p722_p12 }
  0x29   : > { %732 = shalt.err (!%p729_p7)
}
  0x2a   : > { %s802_s21 = smov 128   ;;  %s803_s22 = smov 8  }
  0x2b   : > { %654 = dma.hbm_to_vmem [thread:$0]  (!%p890_p13), %s886_s25, 1024, %s894_s27, %s896_s29, %s802_s21, %s802_s21, %s803_s22  }
  0x2c   : > { %p634_p9 = scmp.ge.s32.totalorder %s799_s9, 1  ;;  %p107_p1 = scmp.lt.s32.totalorder %s799_s9, 3 }
  0x2e   : > { %p108_p3 = pnand %p634_p9, %p107_p1 }
  0x2f   : > { %s927_s23 = sand.u32 (!%p108_p3), 1, %s791_s7  }
  0x30   : > { %111 = sbr.rel (%p108_p3) target bundleno = 399 (0x18f), region = 24  ;;  %s635_s24 = sshll.u32 (!%p108_p3), %s927_s23, 6 }
  0x31   : > { %s114_s26 = scalar_lea.sflag (!%p108_p3), [#allocation4], %s927_s23  ;;  %s933_s30 = scalar_lea.vmem (!%p108_p3), [#allocation3], %s635_s24 }
  0x37   : > { %778 = dma.done.wait (%p866_p6), %s114_s26, 1024  }
  0x38   : > { %780 = vsyncadd (%p866_p6), %s114_s26, 4294966272  ;;  %vm147_vm0 = vcmask 15360   ;;  %vm156_vm1 = vcmask 162960   ;;  %v804_v0 = vmov 0.0   ;;  %vm138_vm2 = vcmask 156672   ;;  %v167_v1 = vld [vmem:[%s933_s30 + $0x10] sm:$0xff] }
  0x39   : > { %150 = vst.msk [vmem:[#allocation2 + $0x1a] sm:$0xff] %vm147_vm0, %v804_v0  ;;  %148 = vst.msk [vmem:[#allocation2 + $0x2] sm:$0xff] %vm147_vm0, %v804_v0  ;;  %v165_v2 = vld [vmem:[%s933_s30] sm:$0xff]  ;;  %s805_s17 = smov 2   ;;  %v168_v3 = vld [vmem:[%s933_s30 + $0x18] sm:$0xff]  ;;  %vm205_vm3 = vcmask 146448  }
  0x3a   : > { %149 = vst.msk [vmem:[#allocation2 + $0xa] sm:$0xff] %vm147_vm0, %v804_v0  ;;  %151 = vst.msk [vmem:[#allocation2 + $0x22] sm:$0xff] %vm147_vm0, %v804_v0  ;;  %185 = vrot.lane.b32.xlu1 %v167_v1, %s805_s17  ;;  %181 = vrot.lane.b32.xlu0 %v165_v2, %s805_s17  ;;  %v166_v4 = vld [vmem:[%s933_s30 + $0x8] sm:$0xff]  ;;  %v169_v6 = vld [vmem:[%s933_s30 + $0x20] sm:$0xff]  ;;  %vm238_vm4 = vcmask 1046528   ;;  %vm275_vm5 = vcmask 1045504  }
  0x3b   : > { %152 = vst.msk [vmem:[#allocation2 + $0x32] sm:$0xff] %vm147_vm0, %v804_v0  ;;  %153 = vst.msk [vmem:[#allocation2 + $0x3a] sm:$0xff] %vm147_vm0, %v804_v0  ;;  %v170_v5 = vld [vmem:[%s933_s30 + $0x28] sm:$0xff]  ;;  %v172_v7 = vld [vmem:[%s933_s30 + $0x38] sm:$0xff]  ;;  %vm312_vm6 = vcmask 1044480   ;;  %vm349_vm7 = vcmask 1043456  }
  0x3c   : > { %154 = vst.msk [vmem:[#allocation2 + $0x4a] sm:$0xff] %vm147_vm0, %v804_v0  ;;  %155 = vst.msk [vmem:[#allocation2 + $0x52] sm:$0xff] %vm147_vm0, %v804_v0  ;;  %v171_v8 = vld [vmem:[%s933_s30 + $0x30] sm:$0xff]  ;;  %s806_s25 = smov 127   ;;  %s807_s27 = smov 126   ;;  %vm530_vm8 = vcmask 130048  }
  0x3d   : > { %159 = vst.msk [vmem:[#allocation2 + $0x1a] sm:$0xff] %vm156_vm1, %v804_v0  ;;  %157 = vst.msk [vmem:[#allocation2 + $0x2] sm:$0xff] %vm156_vm1, %v804_v0  ;;  %s808_s28 = smov 125   ;;  %s809_s29 = smov 124  }
  0x3e   : > { %158 = vst.msk [vmem:[#allocation2 + $0xa] sm:$0xff] %vm156_vm1, %v804_v0  ;;  %160 = vst.msk [vmem:[#allocation2 + $0x22] sm:$0xff] %vm156_vm1, %v804_v0  ;;  %187 = vrot.lane.b32.xlu1 %v168_v3, %s805_s17  ;;  %183 = vrot.lane.b32.xlu0 %v166_v4, %s805_s17  ;;  %s1087_s2 = scalar_lea.vmem [#allocation6], %s635_s24  ;;  %s646_s3 = sshll.u32 %s844_s10, 10 }
  0x3f   : > { %161 = vst.msk [vmem:[#allocation2 + $0x32] sm:$0xff] %vm156_vm1, %v804_v0  ;;  %162 = vst.msk [vmem:[#allocation2 + $0x3a] sm:$0xff] %vm156_vm1, %v804_v0  ;;  %s554_s4 = sshll.u32 %s1087_s2, 4  ;;  %s1111_s13 = scalar_lea.hbm %s1160_s1, %s646_s3  ;;  %s1113_s4 = int_to_ptr.vmem [resolvable:$true] %s554_s4 }
  0x40   : > { %163 = vst.msk [vmem:[#allocation2 + $0x4a] sm:$0xff] %vm156_vm1, %v804_v0  ;;  %164 = vst.msk [vmem:[#allocation2 + $0x52] sm:$0xff] %vm156_vm1, %v804_v0  ;;  %s540_s10 = scalar_lea.sflag [#allocation5], %s927_s23  ;;  %s733_s14 = scalar_lea.vmem %s1113_s4, 1024 }
  0x41   : > { %143 = vst.msk [vmem:[#allocation2 + $0x12] sm:$0x3] %vm138_vm2, %v804_v0  ;;  %139 = vst.msk [vmem:[#allocation2] sm:$0x3] %vm138_vm2, %v804_v0  ;;  %p734_p6 = scmp.ne.s32.totalorder %s1113_s4, %s733_s14  ;;  %p1167_p11 = scmp.ne.s32.totalorder %s1164_s18, 0 }
  0x42   : > { %140 = vst.msk [vmem:[#allocation2 + $0x18] sm:$0x3] %vm138_vm2, %v804_v0  ;;  %141 = vst.msk [vmem:[#allocation2 + $0x30] sm:$0x3] %vm138_vm2, %v804_v0  ;;  %191 = vrot.lane.b32.xlu1 %v170_v5, %s805_s17  ;;  %189 = vrot.lane.b32.xlu0 %v169_v6, %s805_s17  ;;  %s810_s16 = smov [#allocation6]  }
  0x43   : > { %142 = vst.msk [vmem:[#allocation2 + $0x48] sm:$0x3] %vm138_vm2, %v804_v0  ;;  %144 = vst.msk [vmem:[#allocation2 + $0x2a] sm:$0x3] %vm138_vm2, %v804_v0  ;;  %p735_p12 = pnand %p734_p6, %p1167_p11  ;;  %s737_s20 = sshll.u32 %s810_s16, 4  ;;  %s738_s20 = int_to_ptr.vmem [resolvable:$false] %s737_s20 }
  0x44   : > { %145 = vst.msk [vmem:[#allocation2 + $0x42] sm:$0x3] %vm138_vm2, %v804_v0  ;;  %146 = vst.msk [vmem:[#allocation2 + $0x5a] sm:$0x3] %vm138_vm2, %v804_v0  ;;  %s739_s21 = scalar_lea.vmem %s738_s20, 2048  ;;  %p740_p8 = scmp.lt.s32.totalorder %s1113_s4, %s738_s20 }
  0x45   : > { %p736_p13 = pneg %p735_p12  ;;  %p741_p10 = scmp.lt.s32.totalorder %s739_s21, %s733_s14 }
  0x46   : > { %195 = vrot.lane.b32.xlu1 %v172_v7, %s805_s17  ;;  %193 = vrot.lane.b32.xlu0 %v171_v8, %s805_s17 }
  0x47   : > { %p742_p0 = por %p741_p10, %p740_p8 }
  0x49   : > { %p743_p2 = pnand %p742_p0, %p736_p13 }
  0xac   : > { %v186_v9 = vpop.permute.xlu1 %185  ;;  %v182_v10 = vpop.permute.xlu0 %181 }
  0xad   : > { %208 = vst.msk [vmem:[#allocation2 + $0x1a] sm:$0xff] %vm205_vm3, %v186_v9  ;;  %206 = vst.msk [vmem:[#allocation2 + $0x2] sm:$0xff] %vm205_vm3, %v182_v10 }
  0xb0   : > { %v188_v11 = vpop.permute.xlu1 %187  ;;  %v184_v12 = vpop.permute.xlu0 %183 }
  0xb1   : > { %209 = vst.msk [vmem:[#allocation2 + $0x22] sm:$0xff] %vm205_vm3, %v188_v11  ;;  %207 = vst.msk [vmem:[#allocation2 + $0xa] sm:$0xff] %vm205_vm3, %v184_v12 }
  0xb4   : > { %v192_v13 = vpop.permute.xlu1 %191  ;;  %v190_v14 = vpop.permute.xlu0 %189  ;;  %v214_v15 = vld [vmem:[#allocation2] sm:$0xff]  ;;  %v969_v16 = vld [vmem:[#allocation2 + $0x18] sm:$0xff] }
  0xb5   : > { %211 = vst.msk [vmem:[#allocation2 + $0x3a] sm:$0xff] %vm205_vm3, %v192_v13  ;;  %210 = vst.msk [vmem:[#allocation2 + $0x32] sm:$0xff] %vm205_vm3, %v190_v14  ;;  %v239_v17 = vrot.slane %v214_v15, 1  ;;  %v276_v18 = vrot.slane %v214_v15, 2  ;;  %v313_v19 = vrot.slane %v214_v15, 3  ;;  %v350_v20 = vrot.slane %v214_v15, 4 }
  0xb6   : > { %v244_v25 = vrot.slane %v969_v16, 1  ;;  %v281_v26 = vrot.slane %v969_v16, 2  ;;  %v318_v27 = vrot.slane %v969_v16, 3  ;;  %v355_v41 = vrot.slane %v969_v16, 4 }
  0xb8   : > { %v196_v21 = vpop.permute.xlu1 %195  ;;  %v194_v22 = vpop.permute.xlu0 %193  ;;  %v215_v23 = vld [vmem:[#allocation2 + $0x8] sm:$0xff]  ;;  %v216_v24 = vld [vmem:[#allocation2 + $0x10] sm:$0xf]  ;;  %v976_v32 = vld [vmem:[#allocation2 + $0x20] sm:$0xff] }
  0xb9   : > { %213 = vst.msk [vmem:[#allocation2 + $0x52] sm:$0xff] %vm205_vm3, %v196_v21  ;;  %212 = vst.msk [vmem:[#allocation2 + $0x4a] sm:$0xff] %vm205_vm3, %v194_v22  ;;  %v240_v28 = vrot.slane %v215_v23, 1  ;;  %v242_v29 = vrot.slane %v216_v24, 1  ;;  %v277_v30 = vrot.slane %v215_v23, 2  ;;  %v279_v31 = vrot.slane %v216_v24, 2 }
  0xba   : > { %v314_v33 = vrot.slane %v215_v23, 3  ;;  %v316_v34 = vrot.slane %v216_v24, 3  ;;  %v351_v35 = vrot.slane %v215_v23, 4  ;;  %v353_v36 = vrot.slane %v216_v24, 4  ;;  %v219_v37 = vld [vmem:[#allocation2 + $0x28] sm:$0xf] }
  0xbb   : > { %v243_v38 = vsel %vm238_vm4, %v240_v28, %v242_v29  ;;  %v280_v39 = vsel %vm275_vm5, %v277_v30, %v279_v31  ;;  %v241_v40 = vsel %vm238_vm4, %v239_v17, %v240_v28  ;;  %v278_v45 = vsel %vm275_vm5, %v276_v18, %v277_v30 }
  0xbc   : > { %v268_v42 = vadd.f32 %v243_v38, %v215_v23  ;;  %v317_v43 = vsel %vm312_vm6, %v314_v33, %v316_v34  ;;  %v267_v44 = vadd.f32 %v241_v40, %v214_v15  ;;  %v354_v46 = vsel %vm349_vm7, %v351_v35, %v353_v36  ;;  %v993_v62 = vld [vmem:[#allocation2 + $0x38] sm:$0xff]  ;;  %v222_v3 = vld [vmem:[#allocation2 + $0x40] sm:$0xf] }
  0xbd   : > { %v315_v47 = vsel %vm312_vm6, %v313_v19, %v314_v33  ;;  %v245_v48 = vrot.slane %v976_v32, 1  ;;  %v247_v49 = vrot.slane %v219_v37, 1  ;;  %v282_v52 = vrot.slane %v976_v32, 2 }
  0xbe   : > { %v305_v50 = vadd.f32 %v280_v39, %v268_v42  ;;  %v304_v51 = vadd.f32 %v278_v45, %v267_v44  ;;  %v284_v53 = vrot.slane %v219_v37, 2  ;;  %v319_v55 = vrot.slane %v976_v32, 3 }
  0xbf   : > { %v248_v54 = vsel %vm238_vm4, %v245_v48, %v247_v49  ;;  %v321_v56 = vrot.slane %v219_v37, 3  ;;  %v356_v57 = vrot.slane %v976_v32, 4  ;;  %v352_v60 = vsel %vm349_vm7, %v350_v20, %v351_v35 }
  0xc0   : > { %v342_v58 = vadd.f32 %v317_v43, %v305_v50  ;;  %v341_v59 = vadd.f32 %v315_v47, %v304_v51  ;;  %v270_v61 = vadd.f32 %v248_v54, %v976_v32  ;;  %v285_v63 = vsel %vm275_vm5, %v282_v52, %v284_v53  ;;  %v225_v30 = vld [vmem:[#allocation2 + $0x58] sm:$0xf]  ;;  %v223_v47 = vld [vmem:[#allocation2 + $0x48] sm:$0xff] }
  0xc1   : > { %v322_v0 = vsel %vm312_vm6, %v319_v55, %v321_v56  ;;  %v358_v1 = vrot.slane %v219_v37, 4  ;;  %v246_v2 = vsel %vm238_vm4, %v244_v25, %v245_v48  ;;  %v283_v9 = vsel %vm275_vm5, %v281_v26, %v282_v52  ;;  %v224_v25 = vld [vmem:[#allocation2 + $0x50] sm:$0xff] }
  0xc2   : > { %v998_v4 = vadd.f32 %v354_v46, %v342_v58  ;;  %v1000_v5 = vadd.f32 %v352_v60, %v341_v59  ;;  %v307_v6 = vadd.f32 %v285_v63, %v270_v61  ;;  %v269_v7 = vadd.f32 %v246_v2, %v969_v16  ;;  %v220_v16 = vld [vmem:[#allocation2 + $0x30] sm:$0xff] }
  0xc3   : > { %v359_v8 = vsel %vm349_vm7, %v356_v57, %v358_v1  ;;  %v320_v10 = vsel %vm312_vm6, %v318_v27, %v319_v55  ;;  %v250_v11 = vrot.slane %v993_v62, 1  ;;  %v252_v14 = vrot.slane %v222_v3, 1 }
  0xc4   : > { %396 = vrot.lane.b32.xlu1 %v998_v4, %s806_s25  ;;  %394 = vrot.lane.b32.xlu0 %v1000_v5, %s806_s25  ;;  %v344_v12 = vadd.f32 %v322_v0, %v307_v6  ;;  %v306_v13 = vadd.f32 %v283_v9, %v269_v7  ;;  %v287_v15 = vrot.slane %v993_v62, 2  ;;  %v289_v17 = vrot.slane %v222_v3, 2 }
  0xc5   : > { %v324_v18 = vrot.slane %v993_v62, 3  ;;  %v326_v19 = vrot.slane %v222_v3, 3  ;;  %v361_v20 = vrot.slane %v993_v62, 4  ;;  %v253_v23 = vsel %vm238_vm4, %v250_v11, %v252_v14 }
  0xc6   : > { %v1014_v21 = vadd.f32 %v359_v8, %v344_v12  ;;  %v343_v22 = vadd.f32 %v320_v10, %v306_v13  ;;  %v363_v24 = vrot.slane %v222_v3, 4  ;;  %v357_v26 = vsel %vm349_vm7, %v355_v41, %v356_v57 }
  0xc7   : > { %v272_v27 = vadd.f32 %v253_v23, %v993_v62  ;;  %v290_v28 = vsel %vm275_vm5, %v287_v15, %v289_v17  ;;  %v249_v29 = vrot.slane %v220_v16, 1  ;;  %v327_v32 = vsel %vm312_vm6, %v324_v18, %v326_v19 }
  0xc8   : > { %400 = vrot.lane.b32.xlu1 %v1014_v21, %s806_s25  ;;  %v1022_v31 = vadd.f32 %v357_v26, %v343_v22  ;;  %v286_v33 = vrot.slane %v220_v16, 2  ;;  %v323_v34 = vrot.slane %v220_v16, 3  ;;  %v364_v36 = vsel %vm349_vm7, %v361_v20, %v363_v24 }
  0xc9   : > { %v309_v35 = vadd.f32 %v290_v28, %v272_v27  ;;  %v251_v37 = vsel %vm238_vm4, %v249_v29, %v250_v11  ;;  %v255_v38 = vrot.slane %v224_v25, 1  ;;  %v360_v41 = vrot.slane %v220_v16, 4 }
  0xca   : > { %398 = vrot.lane.b32.xlu0 %v1022_v31, %s806_s25  ;;  %v271_v39 = vadd.f32 %v251_v37, %v220_v16  ;;  %v288_v40 = vsel %vm275_vm5, %v286_v33, %v287_v15  ;;  %v257_v42 = vrot.slane %v225_v30, 1  ;;  %v325_v44 = vsel %vm312_vm6, %v323_v34, %v324_v18 }
  0xcb   : > { %v346_v43 = vadd.f32 %v327_v32, %v309_v35  ;;  %v292_v45 = vrot.slane %v224_v25, 2  ;;  %v294_v46 = vrot.slane %v225_v30, 2  ;;  %v329_v50 = vrot.slane %v224_v25, 3 }
  0xcc   : > { %v308_v48 = vadd.f32 %v288_v40, %v271_v39  ;;  %v258_v49 = vsel %vm238_vm4, %v255_v38, %v257_v42  ;;  %v331_v51 = vrot.slane %v225_v30, 3  ;;  %v366_v55 = vrot.slane %v224_v25, 4 }
  0xcd   : > { %v1032_v52 = vadd.f32 %v364_v36, %v346_v43  ;;  %v274_v53 = vadd.f32 %v258_v49, %v224_v25  ;;  %v295_v54 = vsel %vm275_vm5, %v292_v45, %v294_v46  ;;  %v368_v58 = vrot.slane %v225_v30, 4 }
  0xce   : > { %v345_v56 = vadd.f32 %v325_v44, %v308_v48  ;;  %v332_v57 = vsel %vm312_vm6, %v329_v50, %v331_v51  ;;  %v254_v59 = vrot.slane %v223_v47, 1  ;;  %v362_v60 = vsel %vm349_vm7, %v360_v41, %v361_v20 }
  0xcf   : > { %404 = vrot.lane.b32.xlu1 %v1032_v52, %s806_s25  ;;  %v311_v61 = vadd.f32 %v295_v54, %v274_v53  ;;  %v291_v62 = vrot.slane %v223_v47, 2  ;;  %v328_v63 = vrot.slane %v223_v47, 3  ;;  %v369_v7 = vsel %vm349_vm7, %v366_v55, %v368_v58 }
  0xd0   : > { %v1039_v0 = vadd.f32 %v362_v60, %v345_v56  ;;  %v256_v1 = vsel %vm238_vm4, %v254_v59, %v255_v38  ;;  %v365_v9 = vrot.slane %v223_v47, 4 }
  0xd1   : > { %v348_v2 = vadd.f32 %v332_v57, %v311_v61  ;;  %v273_v3 = vadd.f32 %v256_v1, %v223_v47  ;;  %v293_v6 = vsel %vm275_vm5, %v291_v62, %v292_v45  ;;  %v330_v8 = vsel %vm312_vm6, %v328_v63, %v329_v50 }
  0xd2   : > { %402 = vrot.lane.b32.xlu0 %v1039_v0, %s806_s25  ;;  %v367_v13 = vsel %vm349_vm7, %v365_v9, %v366_v55 }
  0xd3   : > { %v1047_v10 = vadd.f32 %v369_v7, %v348_v2  ;;  %v310_v11 = vadd.f32 %v293_v6, %v273_v3 }
  0xd5   : > { %408 = vrot.lane.b32.xlu1 %v1047_v10, %s806_s25  ;;  %v347_v12 = vadd.f32 %v330_v8, %v310_v11 }
  0xd7   : > { %v1052_v14 = vadd.f32 %v367_v13, %v347_v12 }
  0xd9   : > { %406 = vrot.lane.b32.xlu0 %v1052_v14, %s806_s25  ;;  %428 = vrot.lane.b32.xlu1 %v998_v4, %s807_s27 }
  0xdd   : > { %426 = vrot.lane.b32.xlu0 %v1000_v5, %s807_s27  ;;  %432 = vrot.lane.b32.xlu1 %v1014_v21, %s807_s27 }
  0xe1   : > { %430 = vrot.lane.b32.xlu0 %v1022_v31, %s807_s27  ;;  %436 = vrot.lane.b32.xlu1 %v1032_v52, %s807_s27 }
  0xe5   : > { %434 = vrot.lane.b32.xlu0 %v1039_v0, %s807_s27  ;;  %440 = vrot.lane.b32.xlu1 %v1047_v10, %s807_s27 }
  0xe9   : > { %438 = vrot.lane.b32.xlu0 %v1052_v14, %s807_s27  ;;  %460 = vrot.lane.b32.xlu1 %v998_v4, %s808_s28 }
  0xed   : > { %458 = vrot.lane.b32.xlu0 %v1000_v5, %s808_s28  ;;  %464 = vrot.lane.b32.xlu1 %v1014_v21, %s808_s28 }
  0xf1   : > { %462 = vrot.lane.b32.xlu0 %v1022_v31, %s808_s28  ;;  %468 = vrot.lane.b32.xlu1 %v1032_v52, %s808_s28 }
  0xf5   : > { %466 = vrot.lane.b32.xlu0 %v1039_v0, %s808_s28  ;;  %472 = vrot.lane.b32.xlu1 %v1047_v10, %s808_s28 }
  0xf9   : > { %470 = vrot.lane.b32.xlu0 %v1052_v14, %s808_s28  ;;  %492 = vrot.lane.b32.xlu1 %v998_v4, %s809_s29 }
  0xfd   : > { %490 = vrot.lane.b32.xlu0 %v1000_v5, %s809_s29  ;;  %496 = vrot.lane.b32.xlu1 %v1014_v21, %s809_s29 }
 0x101   : > { %494 = vrot.lane.b32.xlu0 %v1022_v31, %s809_s29  ;;  %500 = vrot.lane.b32.xlu1 %v1032_v52, %s809_s29 }
 0x105   : > { %498 = vrot.lane.b32.xlu0 %v1039_v0, %s809_s29  ;;  %504 = vrot.lane.b32.xlu1 %v1047_v10, %s809_s29 }
 0x109   : > { %502 = vrot.lane.b32.xlu0 %v1052_v14, %s809_s29 }
 0x136   : > { %v397_v15 = vpop.permute.xlu1 %396  ;;  %v395_v16 = vpop.permute.xlu0 %394 }
 0x137   : > { %v419_v38 = vadd.f32 %v397_v15, %v998_v4  ;;  %v418_v42 = vadd.f32 %v395_v16, %v1000_v5 }
 0x13a   : > { %v401_v17 = vpop.permute.xlu1 %400 }
 0x13b   : > { %v421_v43 = vadd.f32 %v401_v17, %v1014_v21 }
 0x13c   : > { %v399_v18 = vpop.permute.xlu0 %398 }
 0x13d   : > { %v420_v50 = vadd.f32 %v399_v18, %v1022_v31 }
 0x141   : > { %v405_v19 = vpop.permute.xlu1 %404 }
 0x142   : > { %v423_v51 = vadd.f32 %v405_v19, %v1032_v52 }
 0x144   : > { %v403_v20 = vpop.permute.xlu0 %402 }
 0x145   : > { %v422_v58 = vadd.f32 %v403_v20, %v1039_v0 }
 0x147   : > { %v409_v22 = vpop.permute.xlu1 %408 }
 0x148   : > { %v425_v52 = vadd.f32 %v409_v22, %v1047_v10 }
 0x14b   : > { %v407_v23 = vpop.permute.xlu0 %406  ;;  %v429_v24 = vpop.permute.xlu1 %428 }
 0x14c   : > { %v451_v41 = vadd.f32 %v429_v24, %v419_v38  ;;  %v424_v0 = vadd.f32 %v407_v23, %v1052_v14 }
 0x14f   : > { %v427_v25 = vpop.permute.xlu0 %426  ;;  %v433_v26 = vpop.permute.xlu1 %432 }
 0x150   : > { %v450_v47 = vadd.f32 %v427_v25, %v418_v42  ;;  %v453_v48 = vadd.f32 %v433_v26, %v421_v43 }
 0x153   : > { %v431_v27 = vpop.permute.xlu0 %430  ;;  %v437_v28 = vpop.permute.xlu1 %436 }
 0x154   : > { %v452_v5 = vadd.f32 %v431_v27, %v420_v50  ;;  %v455_v57 = vadd.f32 %v437_v28, %v423_v51 }
 0x157   : > { %v435_v29 = vpop.permute.xlu0 %434  ;;  %v441_v30 = vpop.permute.xlu1 %440 }
 0x158   : > { %v454_v2 = vadd.f32 %v435_v29, %v422_v58  ;;  %v457_v3 = vadd.f32 %v441_v30, %v425_v52 }
 0x15b   : > { %v439_v32 = vpop.permute.xlu0 %438  ;;  %v461_v33 = vpop.permute.xlu1 %460 }
 0x15c   : > { %v483_v44 = vadd.f32 %v461_v33, %v451_v41  ;;  %v456_v15 = vadd.f32 %v439_v32, %v424_v0 }
 0x15f   : > { %v459_v34 = vpop.permute.xlu0 %458  ;;  %v465_v35 = vpop.permute.xlu1 %464 }
 0x160   : > { %v482_v4 = vadd.f32 %v459_v34, %v450_v47  ;;  %v485_v53 = vadd.f32 %v465_v35, %v453_v48 }
 0x163   : > { %v463_v36 = vpop.permute.xlu0 %462  ;;  %v469_v37 = vpop.permute.xlu1 %468 }
 0x164   : > { %v484_v59 = vadd.f32 %v463_v36, %v452_v5  ;;  %v487_v60 = vadd.f32 %v469_v37, %v455_v57 }
 0x167   : > { %v467_v39 = vpop.permute.xlu0 %466  ;;  %v473_v40 = vpop.permute.xlu1 %472 }
 0x168   : > { %v486_v8 = vadd.f32 %v467_v39, %v454_v2  ;;  %v489_v9 = vadd.f32 %v473_v40, %v457_v3 }
 0x16b   : > { %v471_v45 = vpop.permute.xlu0 %470  ;;  %v493_v46 = vpop.permute.xlu1 %492 }
 0x16c   : > { %v515_v49 = vadd.f32 %v493_v46, %v483_v44  ;;  %v488_v18 = vadd.f32 %v471_v45, %v456_v15 }
 0x16e   : > { %v523_v54 = vmul.f32 0.04, %v515_v49 }
 0x16f   : > { %v491_v55 = vpop.permute.xlu0 %490  ;;  %v497_v56 = vpop.permute.xlu1 %496 }
 0x170   : > { %532 = vst.msk [vmem:[%s1087_s2 + $0x8] sm:$0xff] %vm530_vm8, %v523_v54  ;;  %v514_v21 = vadd.f32 %v491_v55, %v482_v4  ;;  %v517_v31 = vadd.f32 %v497_v56, %v485_v53 }
 0x172   : > { %v522_v61 = vmul.f32 0.04, %v514_v21  ;;  %v525_v62 = vmul.f32 0.04, %v517_v31 }
 0x173   : > { %v495_v63 = vpop.permute.xlu0 %494  ;;  %v501_v1 = vpop.permute.xlu1 %500 }
 0x174   : > { %531 = vst.msk [vmem:[%s1087_s2] sm:$0xff] %vm530_vm8, %v522_v61  ;;  %534 = vst.msk [vmem:[%s1087_s2 + $0x18] sm:$0xff] %vm530_vm8, %v525_v62  ;;  %v516_v6 = vadd.f32 %v495_v63, %v484_v59  ;;  %v519_v7 = vadd.f32 %v501_v1, %v487_v60 }
 0x176   : > { %v524_v10 = vmul.f32 0.04, %v516_v6  ;;  %v527_v11 = vmul.f32 0.04, %v519_v7 }
 0x177   : > { %v499_v12 = vpop.permute.xlu0 %498  ;;  %v505_v13 = vpop.permute.xlu1 %504 }
 0x178   : > { %533 = vst.msk [vmem:[%s1087_s2 + $0x10] sm:$0xff] %vm530_vm8, %v524_v10  ;;  %536 = vst.msk [vmem:[%s1087_s2 + $0x28] sm:$0xff] %vm530_vm8, %v527_v11  ;;  %v518_v16 = vadd.f32 %v499_v12, %v486_v8  ;;  %v521_v17 = vadd.f32 %v505_v13, %v489_v9 }
 0x17a   : > { %v526_v14 = vmul.f32 0.04, %v518_v16  ;;  %v529_v19 = vmul.f32 0.04, %v521_v17 }
 0x17b   : > { %v503_v20 = vpop.permute.xlu0 %502 }
 0x17c   : > { %535 = vst.msk [vmem:[%s1087_s2 + $0x20] sm:$0xff] %vm530_vm8, %v526_v14  ;;  %538 = vst.msk [vmem:[%s1087_s2 + $0x38] sm:$0xff] %vm530_vm8, %v529_v19  ;;  %v520_v22 = vadd.f32 %v503_v20, %v488_v18 }
 0x17e   : > { %v528_v23 = vmul.f32 0.04, %v520_v22 }
 0x180   : > { %537 = vst.msk [vmem:[%s1087_s2 + $0x30] sm:$0xff] %vm530_vm8, %v528_v23 }
 0x181   : > { %746 = shalt.err (!%p743_p2)
}
 0x182   : > { %s747_s22 = scalar_lea.hbm %s1111_s13, 1024  ;;  %s751_s30 = scalar_lea.hbm %s1160_s1, 2048 }
 0x183   : > { %p748_p4 = scmp.ne.s32.totalorder %s1111_s13, %s747_s22  ;;  %p752_p9 = scmp.lt.u32.totalorder %s1111_s13, %s1160_s1 }
 0x184   : > { %p753_p1 = scmp.lt.u32.totalorder %s751_s30, %s747_s22  ;;  %p755_p6 = scmp.lt.u32.totalorder %s747_s22, %s1111_s13 }
 0x185   : > { %p749_p5 = pnand %p748_p4, %p1167_p11 }
 0x186   : > { %p754_p3 = por %p753_p1, %p752_p9 }
 0x187   : > { %p750_p7 = pneg %p749_p5 }
 0x188   : > { %p756_p12 = por %p755_p6, %p754_p3 }
 0x18a   : > { %p757_p13 = pnand %p756_p12, %p750_p7 }
 0x18c   : > { %760 = shalt.err (!%p757_p13)
}
 0x18d   : > { %s811_s27 = smov 128   ;;  %s812_s28 = smov 8  }
 0x18e   : > { %649 = dma.vmem_to_hbm [thread:$0]  (%p1167_p11), %s1113_s4, 1024, %s1111_s13, %s540_s10, %s811_s27, %s811_s27, %s812_s28  }
 0x18f PF: > { %s569_s29 = sand.u32 1, %s787_s6   ;;  %p1168_p8 = scmp.ne.s32.totalorder %s1165_s19, 0 }
 0x190   : > { %p1169_p10 = scmp.ge.s32.totalorder %s799_s9, 2  ;;  %s570_s2 = scalar_lea.sflag [#allocation5], %s569_s29 }
 0x192   : > { %p656_p0 = pnand %p1169_p10, %p1168_p8 }
 0x194   : > { %782 = dma.done.wait (!%p656_p0), %s570_s2, 1024  }
 0x195   : > { %784 = vsyncadd (!%p656_p0), %s570_s2, 4294966272  ;;  %p14_p2 = scmp.ge.s32.totalorder %s848_s12, 4   ;;  %s1170_s6 = smov %s791_s7 }
 0x196   : > { %s1171_s7 = smov %s795_s8  ;;  %s1172_s8 = smov %s860_s15 }
 0x197   : > { %s1173_s9 = smov %s848_s12  ;;  %16 = sbr.rel (!%p14_p2) target bundleno = 5 (0x5), region = 69 }
 0x19e   :  { %575 = vsyncpa [#allocation4], 1 }
 0x19f   :  { %577 = vsyncpa [#allocation4 + $0x1], 1 }
 0x1a0   :  { %578 = vsyncpa [#allocation5], 1 }
 0x1a1   :  { %580 = vsyncpa [#allocation5 + $0x1], 1 }

</bundles_post_ra>
